<compile_context>
chip_gen: v5e
topology: v5e:2x2
jax: 0.10.0
libtpu: 0.0.40
codegen_flags: <defaults>
</compile_context>

<pallas_src>
import functools

import jax
import jax.numpy as jnp
from jax.experimental import pallas as pl
from jax.experimental.pallas import tpu as pltpu

_LOG2PI = 1.8378770664093453
_RAW_SCALE_ONE = 0.5413248546129181   # softplus(x) == 1  (pads of the raw-scale head -> scale 1, zero log-contribution)
_NEG_BIG = -1.0e4                     # bias for padded obs dims -> softplus(logit) == 0 exactly
_NEG_INF = -1.0e30                    # padded mixture components (exp underflows to 0 in the LSE)


def _softplus(x):
    # numerically stable softplus (VPU/EUP, f32)
    return jnp.maximum(x, 0.0) + jnp.log(1.0 + jnp.exp(-jnp.abs(x)))


def mog_vae_kernel(x_ref, eps_ref,
                   w1_ref, b1_ref, wms_ref, bms_ref,
                   w2_ref, b2_ref, wout_ref, bout_ref,
                   pw_ref, pc_ref,
                   loss_ref, *, kp, k_real, bf16_act):
    f32 = jnp.float32
    bf16 = jnp.bfloat16
    act_dt = bf16 if bf16_act else f32     # bf16 transcendentals on v6e/v7x, f32 on v5e

    x_bf = x_ref[...]                      # [TB, DP] bf16 (padded obs dims are exactly 0)
    eps = eps_ref[...].astype(f32)         # [TB, KP] (bf16 stream -> f32 math; padded dims 0)

    # ---------------- guide q(z|x): encoder, fused mu/sigma head ----------------
    pre1 = jnp.dot(x_bf, w1_ref[...], preferred_element_type=f32) + b1_ref[...]
    h = jnp.tanh(pre1.astype(act_dt))
    ms = jnp.dot(h.astype(bf16), wms_ref[...], preferred_element_type=f32) + bms_ref[...]  # [TB, 2*KP]
    mu = ms[:, :kp]
    scale = _softplus(ms[:, kp:])          # padded dims: softplus(_RAW_SCALE_ONE) == 1
    z = mu + scale * eps                   # reparameterised sample, padded dims stay 0
    z_bf = z.astype(bf16)

    # ---------------- likelihood p(x|z): decoder + Bernoulli log-prob ----------------
    pre2 = jnp.dot(z_bf, w2_ref[...], preferred_element_type=f32) + b2_ref[...]
    hd = jnp.tanh(pre2.astype(act_dt))
    logits = (jnp.dot(hd.astype(bf16), wout_ref[...], preferred_element_type=f32)
              + bout_ref[...])             # padded obs dims get logit = _NEG_BIG -> zero contribution
    log_p_x_z = jnp.sum(x_bf.astype(f32) * logits - _softplus(logits),
                        axis=-1, keepdims=True)                                     # [TB, 1]

    # ---------------- log q(z|x): (z - mu)/scale == eps exactly -> no divide ----------------
    log_q_z_x = (jnp.sum(-0.5 * eps * eps - jnp.log(scale), axis=-1, keepdims=True)
                 - 0.5 * k_real * _LOG2PI)                                           # [TB, 1]

    # ---------------- MoG prior log p(z): single fused f32 matmul ----------------
    # comp_c = const_c - 0.5*sum_k z_k^2/var_ck + sum_k z_k*mu_ck/var_ck
    #        = const_c + [zz | z] @ concat(-0.5*inv_var.T, (mu*inv_var).T)
    # kept in f32: bf16 quadratic-expansion suffers cancellation for large |z|/|pmu|.
    zq = jnp.concatenate([z * z, z], axis=-1)                                        # [TB, 2*KP]
    comp = pc_ref[...] + jnp.dot(zq, pw_ref[...], preferred_element_type=f32)        # [TB, CP]
    m = jnp.max(comp, axis=-1, keepdims=True)
    log_p_z = m + jnp.log(jnp.sum(jnp.exp(comp - m), axis=-1, keepdims=True))        # [TB, 1]

    # ---------------- ELBO / loss (in-kernel block reduction) ----------------
    # analytic kl_divergence(Normal, MixtureSameFamily) is NotImplemented -> MC fallback
    neg_elbo = -(log_p_x_z - (log_q_z_x - log_p_z))                                  # [TB, 1]
    loss_ref[...] = jnp.sum(neg_elbo, axis=0, keepdims=True)[None]                   # (1, 1, 1) partial sum


def _round_up(n, m):
    return ((n + m - 1) // m) * m


def _pad2(a, rows, cols, val=0.0):
    return jnp.pad(a, ((0, rows - a.shape[0]), (0, cols - a.shape[1])), constant_values=val)


def _device_kind():
    try:
        return jax.devices()[0].device_kind.lower()
    except Exception:
        return ""


def _pick_tb(batch, kind, fits):
    """Single block when it fits (small batches); else largest MXU-friendly divisor that fits.
    On v7x keep >= 2 grid steps so the 'parallel' batch axis uses both TensorCores."""
    is_v7 = "v7" in kind
    cands = [batch] + [c for c in (1024, 512, 256, 128, 64, 32, 16, 8)
                       if c < batch and batch % c == 0]
    tb = next((c for c in cands if fits(c)), cands[-1])
    if is_v7 and tb == batch and batch % 2 == 0 and (batch // 2) % 8 == 0:
        tb = batch // 2
    return tb


def mog_vae_loss(x_img, eps, params, *, block_batch=None):
    B = x_img.shape[0]
    x = x_img.reshape(B, -1).astype(jnp.float32)     # flatten obs dims (NCHW row-major)
    D = x.shape[1]
    Hdim = params["w1"].shape[1]
    K = params["wmu"].shape[1]
    C = params["pmu"].shape[0]

    DP, HP, KP, CP = (_round_up(d, 128) for d in (D, Hdim, K, C))

    bf16, f32 = jnp.bfloat16, jnp.float32

    kind = _device_kind()
    is_v7 = "v7" in kind
    use_bf16_act = ("v6" in kind) or is_v7            # bf16 EUP only on v6e/v7x; v5e/others stay f32

    # ---- batch inputs: padded lane-dense, bf16 for halved DMA / MXU operands ----
    x_p = _pad2(x, B, DP).astype(bf16)
    eps_p = _pad2(eps.astype(f32), B, KP).astype(bf16)

    # ---- dense weights: zero-padded to (8,128)-friendly shapes, bf16 MXU operands, f32 biases ----
    w1 = _pad2(params["w1"], DP, HP).astype(bf16)
    b1 = _pad2(params["b1"], 1, HP).astype(f32)
    wms = jnp.concatenate([_pad2(params["wmu"], HP, KP),
                           _pad2(params["wsig"], HP, KP)], axis=1).astype(bf16)      # fused mu|sigma head
    bms = jnp.concatenate([_pad2(params["bmu"], 1, KP),
                           _pad2(params["bsig"], 1, KP, val=_RAW_SCALE_ONE)], axis=1).astype(f32)
    w2 = _pad2(params["w2"], KP, HP).astype(bf16)
    b2 = _pad2(params["b2"], 1, HP).astype(f32)
    wout = _pad2(params["wout"], HP, DP).astype(bf16)
    bout = _pad2(params["bout"], 1, DP, val=_NEG_BIG).astype(f32)

    # ---- MoG prior: all parameter-only math hoisted; single fused f32 weight matrix ----
    logw = jax.nn.log_softmax(params["mix_logits"].astype(f32), axis=-1)              # [1, C]
    pscale = jax.nn.softplus(params["praw"].astype(f32))                              # [C, K]
    inv_var = 1.0 / (pscale * pscale)
    prior_w = jnp.concatenate([_pad2((-0.5 * inv_var).T, KP, CP),                     # zz rows
                               _pad2((params["pmu"] * inv_var).T, KP, CP)],           # z rows
                              axis=0).astype(f32)                                     # [2*KP, CP]
    prior_const = (logw
                   - jnp.sum(jnp.log(pscale), axis=-1)[None, :]
                   - 0.5 * K * _LOG2PI
                   - 0.5 * jnp.sum(params["pmu"] ** 2 * inv_var, axis=-1)[None, :])
    prior_const = _pad2(prior_const, 1, CP, val=_NEG_INF).astype(f32)                 # [1, CP]

    ins = (x_p, eps_p, w1, b1, wms, bms, w2, b2, wout, bout, prior_w, prior_const)

    # ---- VMEM budget (generation-aware); weights counted 2x for default double buffering ----
    weight_bytes = sum(int(a.size) * a.dtype.itemsize for a in ins[2:])
    if is_v7:
        budget_cap, limit_cap = 48 << 20, 56 << 20     # 64 MiB part: leave compiler headroom
    elif ("v5" in kind) or ("v6" in kind):
        budget_cap, limit_cap = 96 << 20, 100 << 20    # 128 MiB parts: use most of it
    else:
        budget_cap, limit_cap = 48 << 20, 64 << 20     # unknown part: conservative

    def _needed(tb):
        stream = 2 * (tb * DP * 2 + tb * KP * 2)                       # double-buffered bf16 x / eps
        acts = tb * (3 * DP + 2 * HP + 8 * KP + 2 * CP) * 4            # f32 activations (generous)
        return 2 * weight_bytes + stream + acts + (6 << 20)

    TB = block_batch if block_batch is not None else _pick_tb(B, kind, lambda tb: _needed(tb) <= budget_cap)
    assert B % TB == 0, "batch must be divisible by the batch tile"
    G = B // TB

    vmem_limit = int(min(limit_cap, max(32 << 20, _needed(TB))))

    in_specs = ([pl.BlockSpec((TB, DP), lambda b: (b, 0)),          # x tile, pipelined over batch
                 pl.BlockSpec((TB, KP), lambda b: (b, 0))]          # eps tile (bf16)
                + [pl.BlockSpec(a.shape, lambda b: (0, 0)) for a in ins[2:]])   # weights stay VMEM-resident

    kernel = functools.partial(mog_vae_kernel, kp=KP, k_real=K, bf16_act=use_bf16_act)

    cost = pl.CostEstimate(
        flops=int(2 * B * (DP * HP + HP * 2 * KP + KP * HP + HP * DP + 2 * KP * CP)),
        transcendentals=int(B * (2 * HP + 2 * DP + 3 * KP + CP)),
        bytes_accessed=int(sum(int(a.size) * a.dtype.itemsize for a in ins) + G * 4),
    )

    per_block = pl.pallas_call(
        kernel,
        out_shape=jax.ShapeDtypeStruct((G, 1, 1), f32),
        grid=(G,),
        in_specs=in_specs,
        out_specs=pl.BlockSpec((1, 1, 1), lambda b: (b, 0, 0)),
        compiler_params=pltpu.CompilerParams(
            dimension_semantics=("parallel",),           # batch axis splits across TCs (v7x megacore)
            vmem_limit_bytes=vmem_limit),
        cost_estimate=cost,
    )(*ins)

    return jnp.sum(per_block) / B                        # loss.mean(0)


def reference_loss(x_img, eps, p):
    """Pure-JAX f32 reference mirroring the PyTorch forward semantics."""
    x = x_img.reshape(x_img.shape[0], -1).astype(jnp.float32)
    h = jnp.tanh(x @ p["w1"] + p["b1"])
    mu = h @ p["wmu"] + p["bmu"]
    scale = jax.nn.softplus(h @ p["wsig"] + p["bsig"])
    z = mu + scale * eps
    hd = jnp.tanh(z @ p["w2"] + p["b2"])
    logits = hd @ p["wout"] + p["bout"]
    log_px = jnp.sum(x * logits - jax.nn.softplus(logits), axis=-1)
    log_q = jnp.sum(-0.5 * ((z - mu) / scale) ** 2 - jnp.log(scale) - 0.5 * _LOG2PI, axis=-1)
    pscale = jax.nn.softplus(p["praw"])
    logw = jax.nn.log_softmax(p["mix_logits"][0])
    comp = (-0.5 * jnp.sum(((z[:, None, :] - p["pmu"][None]) / pscale[None]) ** 2, axis=-1)
            - jnp.sum(jnp.log(pscale), axis=-1)[None]
            - 0.5 * z.shape[-1] * _LOG2PI)               # [B, C]
    log_pz = jax.scipy.special.logsumexp(logw[None] + comp, axis=-1)
    loss = -(log_px - (log_q - log_pz))
    return jnp.mean(loss)


def init_params(key, D, Hdim, K, C):
    ks = jax.random.split(key, 7)
    s = lambda n: 1.0 / (n ** 0.5)
    return {
        "w1":   jax.random.normal(ks[0], (D, Hdim), jnp.float32) * s(D),
        "b1":   jnp.zeros((1, Hdim), jnp.float32),
        "wmu":  jax.random.normal(ks[1], (Hdim, K), jnp.float32) * s(Hdim),
        "bmu":  jnp.zeros((1, K), jnp.float32),
        "wsig": jax.random.normal(ks[2], (Hdim, K), jnp.float32) * s(Hdim),
        "bsig": jnp.zeros((1, K), jnp.float32),
        "w2":   jax.random.normal(ks[3], (K, Hdim), jnp.float32) * s(K),
        "b2":   jnp.zeros((1, Hdim), jnp.float32),
        "wout": jax.random.normal(ks[4], (Hdim, D), jnp.float32) * s(Hdim),
        "bout": jnp.zeros((1, D), jnp.float32),
        "mix_logits": jax.random.normal(ks[5], (1, C), jnp.float32) * 0.1,
        "pmu":  jax.random.normal(ks[6], (C, K), jnp.float32),
        "praw": jnp.zeros((C, K), jnp.float32),           # softplus(0) ~ 0.693 prior scales
    }


if __name__ == "__main__":
    key = jax.random.PRNGKey(0)
    B, Ci, Hi, Wi = 16, 1, 8, 8           # NCHW image batch
    K_lat, Hdim, C_mix = 16, 32, 4
    D = Ci * Hi * Wi

    kx, keps, kp = jax.random.split(key, 3)
    x_img = (jax.random.uniform(kx, (B, Ci, Hi, Wi)) < 0.5).astype(jnp.float32)   # binary "images"
    # eps rounded to bf16 precision (it is streamed as bf16) so kernel and reference use identical noise
    eps = jax.random.normal(keps, (B, K_lat), jnp.float32).astype(jnp.bfloat16).astype(jnp.float32)

    params = init_params(kp, D, Hdim, K_lat, C_mix)

    # Tile size picked automatically: single block (TB=B) on v5e/v6e, split across both TCs on v7x.
    loss = mog_vae_loss(x_img, eps, params)
    loss = jax.block_until_ready(loss)

    ref = reference_loss(x_img, eps, params)
    assert bool(jnp.isfinite(loss)), "loss is not finite"
    assert jnp.allclose(loss, ref, rtol=5e-2, atol=5e-2), (loss, ref)
    print("KERNEL_OK")
</pallas_src>

<mosaic_0001>
module attributes {stable_mosaic.version = 11 : i64} {
  func.func @mog_vae_kernel(%arg0: i32, %arg1: memref<16x128xbf16, #tpu.memory_space<vmem>>, %arg2: memref<16x128xbf16, #tpu.memory_space<vmem>>, %arg3: memref<128x128xbf16, #tpu.memory_space<vmem>>, %arg4: memref<1x128xf32, #tpu.memory_space<vmem>>, %arg5: memref<128x256xbf16, #tpu.memory_space<vmem>>, %arg6: memref<1x256xf32, #tpu.memory_space<vmem>>, %arg7: memref<128x128xbf16, #tpu.memory_space<vmem>>, %arg8: memref<1x128xf32, #tpu.memory_space<vmem>>, %arg9: memref<128x128xbf16, #tpu.memory_space<vmem>>, %arg10: memref<1x128xf32, #tpu.memory_space<vmem>>, %arg11: memref<256x128xf32, #tpu.memory_space<vmem>>, %arg12: memref<1x128xf32, #tpu.memory_space<vmem>>, %arg13: memref<1x1x1xf32, #tpu.memory_space<vmem>>) attributes {dimension_semantics = [#tpu.dimension_semantics<parallel>], iteration_bounds = array<i64: 1>, scalar_prefetch = 0 : i64, scratch_operands = 0 : i64, tpu.core_type = #tpu.core_type<tc>, window_params = [{transform_indices = @transform_0, window_bounds = array<i64: 16, 128>}, {transform_indices = @transform_1, window_bounds = array<i64: 16, 128>}, {pipeline_mode = #tpu.pipeline_mode<synchronous>, transform_indices = @transform_2, window_bounds = array<i64: 128, 128>}, {pipeline_mode = #tpu.pipeline_mode<synchronous>, transform_indices = @transform_3, window_bounds = array<i64: 1, 128>}, {pipeline_mode = #tpu.pipeline_mode<synchronous>, transform_indices = @transform_4, window_bounds = array<i64: 128, 256>}, {pipeline_mode = #tpu.pipeline_mode<synchronous>, transform_indices = @transform_5, window_bounds = array<i64: 1, 256>}, {pipeline_mode = #tpu.pipeline_mode<synchronous>, transform_indices = @transform_6, window_bounds = array<i64: 128, 128>}, {pipeline_mode = #tpu.pipeline_mode<synchronous>, transform_indices = @transform_7, window_bounds = array<i64: 1, 128>}, {pipeline_mode = #tpu.pipeline_mode<synchronous>, transform_indices = @transform_8, window_bounds = array<i64: 128, 128>}, {pipeline_mode = #tpu.pipeline_mode<synchronous>, transform_indices = @transform_9, window_bounds = array<i64: 1, 128>}, {pipeline_mode = #tpu.pipeline_mode<synchronous>, transform_indices = @transform_10, window_bounds = array<i64: 256, 128>}, {pipeline_mode = #tpu.pipeline_mode<synchronous>, transform_indices = @transform_11, window_bounds = array<i64: 1, 128>}, {transform_indices = @transform_12, window_bounds = array<i64: 1, 1, 1>}]} {
    %c0 = arith.constant 0 : index
    %c0_0 = arith.constant 0 : index
    %0 = vector.load %arg1[%c0, %c0_0] : memref<16x128xbf16, #tpu.memory_space<vmem>>, vector<16x128xbf16>
    %c0_1 = arith.constant 0 : index
    %c0_2 = arith.constant 0 : index
    %1 = vector.load %arg2[%c0_1, %c0_2] : memref<16x128xbf16, #tpu.memory_space<vmem>>, vector<16x128xbf16>
    %2 = arith.extf %1 : vector<16x128xbf16> to vector<16x128xf32>
    %c0_3 = arith.constant 0 : index
    %c0_4 = arith.constant 0 : index
    %3 = vector.load %arg3[%c0_3, %c0_4] : memref<128x128xbf16, #tpu.memory_space<vmem>>, vector<128x128xbf16>
    %cst = arith.constant dense<0.000000e+00> : vector<16x128xf32>
    %4 = tpu.matmul %0, %3, %cst {dimension_numbers = #tpu.dot_dimension_numbers<[1], [0], [0], [1], [0, 0, 1, 1], [], []>} : vector<16x128xbf16>, vector<128x128xbf16>, vector<16x128xf32> -> vector<16x128xf32>
    %c0_5 = arith.constant 0 : index
    %c0_6 = arith.constant 0 : index
    %5 = vector.load %arg4[%c0_5, %c0_6] : memref<1x128xf32, #tpu.memory_space<vmem>>, vector<1x128xf32>
    %6 = vector.broadcast %5 : vector<1x128xf32> to vector<16x128xf32>
    %7 = arith.addf %4, %6 : vector<16x128xf32>
    %8 = math.tanh %7 : vector<16x128xf32>
    %9 = arith.truncf %8 : vector<16x128xf32> to vector<16x128xbf16>
    %c0_7 = arith.constant 0 : index
    %c0_8 = arith.constant 0 : index
    %10 = vector.load %arg5[%c0_7, %c0_8] : memref<128x256xbf16, #tpu.memory_space<vmem>>, vector<128x256xbf16>
    %cst_9 = arith.constant dense<0.000000e+00> : vector<16x256xf32>
    %11 = tpu.matmul %9, %10, %cst_9 {dimension_numbers = #tpu.dot_dimension_numbers<[1], [0], [0], [1], [0, 0, 1, 1], [], []>} : vector<16x128xbf16>, vector<128x256xbf16>, vector<16x256xf32> -> vector<16x256xf32>
    %c0_10 = arith.constant 0 : index
    %c0_11 = arith.constant 0 : index
    %12 = vector.load %arg6[%c0_10, %c0_11] : memref<1x256xf32, #tpu.memory_space<vmem>>, vector<1x256xf32>
    %13 = vector.broadcast %12 : vector<1x256xf32> to vector<16x256xf32>
    %14 = arith.addf %11, %13 : vector<16x256xf32>
    %15 = vector.extract_strided_slice %14 {offsets = [0, 0], sizes = [16, 128], strides = [1, 1]} : vector<16x256xf32> to vector<16x128xf32>
    %16 = vector.extract_strided_slice %14 {offsets = [0, 128], sizes = [16, 128], strides = [1, 1]} : vector<16x256xf32> to vector<16x128xf32>
    %cst_12 = arith.constant 0.000000e+00 : f32
    %17 = vector.broadcast %cst_12 : f32 to vector<16x128xf32>
    %18 = arith.maximumf %16, %17 : vector<16x128xf32>
    %19 = math.absf %16 : vector<16x128xf32>
    %cst_13 = arith.constant 0.000000e+00 : f32
    %20 = vector.broadcast %cst_13 : f32 to vector<16x128xf32>
    %21 = arith.subf %20, %19 : vector<16x128xf32>
    %22 = math.exp %21 : vector<16x128xf32>
    %cst_14 = arith.constant 1.000000e+00 : f32
    %23 = vector.broadcast %cst_14 : f32 to vector<16x128xf32>
    %24 = arith.addf %23, %22 : vector<16x128xf32>
    %25 = math.log %24 : vector<16x128xf32>
    %26 = arith.addf %18, %25 : vector<16x128xf32>
    %27 = arith.mulf %26, %2 : vector<16x128xf32>
    %28 = arith.addf %15, %27 : vector<16x128xf32>
    %29 = arith.truncf %28 : vector<16x128xf32> to vector<16x128xbf16>
    %c0_15 = arith.constant 0 : index
    %c0_16 = arith.constant 0 : index
    %30 = vector.load %arg7[%c0_15, %c0_16] : memref<128x128xbf16, #tpu.memory_space<vmem>>, vector<128x128xbf16>
    %cst_17 = arith.constant dense<0.000000e+00> : vector<16x128xf32>
    %31 = tpu.matmul %29, %30, %cst_17 {dimension_numbers = #tpu.dot_dimension_numbers<[1], [0], [0], [1], [0, 0, 1, 1], [], []>} : vector<16x128xbf16>, vector<128x128xbf16>, vector<16x128xf32> -> vector<16x128xf32>
    %c0_18 = arith.constant 0 : index
    %c0_19 = arith.constant 0 : index
    %32 = vector.load %arg8[%c0_18, %c0_19] : memref<1x128xf32, #tpu.memory_space<vmem>>, vector<1x128xf32>
    %33 = vector.broadcast %32 : vector<1x128xf32> to vector<16x128xf32>
    %34 = arith.addf %31, %33 : vector<16x128xf32>
    %35 = math.tanh %34 : vector<16x128xf32>
    %36 = arith.truncf %35 : vector<16x128xf32> to vector<16x128xbf16>
    %c0_20 = arith.constant 0 : index
    %c0_21 = arith.constant 0 : index
    %37 = vector.load %arg9[%c0_20, %c0_21] : memref<128x128xbf16, #tpu.memory_space<vmem>>, vector<128x128xbf16>
    %cst_22 = arith.constant dense<0.000000e+00> : vector<16x128xf32>
    %38 = tpu.matmul %36, %37, %cst_22 {dimension_numbers = #tpu.dot_dimension_numbers<[1], [0], [0], [1], [0, 0, 1, 1], [], []>} : vector<16x128xbf16>, vector<128x128xbf16>, vector<16x128xf32> -> vector<16x128xf32>
    %c0_23 = arith.constant 0 : index
    %c0_24 = arith.constant 0 : index
    %39 = vector.load %arg10[%c0_23, %c0_24] : memref<1x128xf32, #tpu.memory_space<vmem>>, vector<1x128xf32>
    %40 = vector.broadcast %39 : vector<1x128xf32> to vector<16x128xf32>
    %41 = arith.addf %38, %40 : vector<16x128xf32>
    %42 = arith.extf %0 : vector<16x128xbf16> to vector<16x128xf32>
    %43 = arith.mulf %42, %41 : vector<16x128xf32>
    %cst_25 = arith.constant 0.000000e+00 : f32
    %44 = vector.broadcast %cst_25 : f32 to vector<16x128xf32>
    %45 = arith.maximumf %41, %44 : vector<16x128xf32>
    %46 = math.absf %41 : vector<16x128xf32>
    %cst_26 = arith.constant 0.000000e+00 : f32
    %47 = vector.broadcast %cst_26 : f32 to vector<16x128xf32>
    %48 = arith.subf %47, %46 : vector<16x128xf32>
    %49 = math.exp %48 : vector<16x128xf32>
    %cst_27 = arith.constant 1.000000e+00 : f32
    %50 = vector.broadcast %cst_27 : f32 to vector<16x128xf32>
    %51 = arith.addf %50, %49 : vector<16x128xf32>
    %52 = math.log %51 : vector<16x128xf32>
    %53 = arith.addf %45, %52 : vector<16x128xf32>
    %54 = arith.subf %43, %53 : vector<16x128xf32>
    %cst_28 = arith.constant dense<0.000000e+00> : vector<16xf32>
    %55 = vector.multi_reduction <add>, %54, %cst_28 [1] : vector<16x128xf32> to vector<16xf32>
    %56 = vector.shape_cast %55 : vector<16xf32> to vector<16x1xf32>
    %cst_29 = arith.constant -5.000000e-01 : f32
    %57 = vector.broadcast %cst_29 : f32 to vector<16x128xf32>
    %58 = arith.mulf %57, %2 : vector<16x128xf32>
    %59 = arith.mulf %58, %2 : vector<16x128xf32>
    %60 = math.log %26 : vector<16x128xf32>
    %61 = arith.subf %59, %60 : vector<16x128xf32>
    %cst_30 = arith.constant dense<0.000000e+00> : vector<16xf32>
    %62 = vector.multi_reduction <add>, %61, %cst_30 [1] : vector<16x128xf32> to vector<16xf32>
    %63 = vector.shape_cast %62 : vector<16xf32> to vector<16x1xf32>
    %cst_31 = arith.constant 14.7030163 : f32
    %64 = vector.broadcast %cst_31 : f32 to vector<16x1xf32>
    %65 = arith.subf %63, %64 : vector<16x1xf32>
    %66 = arith.mulf %28, %28 : vector<16x128xf32>
    %67 = tpu.concatenate %66, %28 in 1 : vector<16x128xf32>, vector<16x128xf32> -> vector<16x256xf32>
    %c0_32 = arith.constant 0 : index
    %c0_33 = arith.constant 0 : index
    %68 = vector.load %arg12[%c0_32, %c0_33] : memref<1x128xf32, #tpu.memory_space<vmem>>, vector<1x128xf32>
    %c0_34 = arith.constant 0 : index
    %c0_35 = arith.constant 0 : index
    %69 = vector.load %arg11[%c0_34, %c0_35] : memref<256x128xf32, #tpu.memory_space<vmem>>, vector<256x128xf32>
    %cst_36 = arith.constant dense<0.000000e+00> : vector<16x128xf32>
    %70 = tpu.matmul %67, %69, %cst_36 {dimension_numbers = #tpu.dot_dimension_numbers<[1], [0], [0], [1], [0, 0, 1, 1], [], []>} : vector<16x256xf32>, vector<256x128xf32>, vector<16x128xf32> -> vector<16x128xf32>
    %71 = vector.broadcast %68 : vector<1x128xf32> to vector<16x128xf32>
    %72 = arith.addf %71, %70 : vector<16x128xf32>
    %cst_37 = arith.constant dense<0xFF800000> : vector<16xf32>
    %73 = vector.multi_reduction <maximumf>, %72, %cst_37 [1] : vector<16x128xf32> to vector<16xf32>
    %74 = vector.shape_cast %73 : vector<16xf32> to vector<16x1xf32>
    %75 = vector.broadcast %74 : vector<16x1xf32> to vector<16x128xf32>
    %76 = arith.subf %72, %75 : vector<16x128xf32>
    %77 = math.exp %76 : vector<16x128xf32>
    %cst_38 = arith.constant dense<0.000000e+00> : vector<16xf32>
    %78 = vector.multi_reduction <add>, %77, %cst_38 [1] : vector<16x128xf32> to vector<16xf32>
    %79 = vector.shape_cast %78 : vector<16xf32> to vector<16x1xf32>
    %80 = math.log %79 : vector<16x1xf32>
    %81 = arith.addf %74, %80 : vector<16x1xf32>
    %82 = arith.subf %65, %81 : vector<16x1xf32>
    %83 = arith.subf %56, %82 : vector<16x1xf32>
    %cst_39 = arith.constant 0.000000e+00 : f32
    %84 = vector.broadcast %cst_39 : f32 to vector<16x1xf32>
    %85 = arith.subf %84, %83 : vector<16x1xf32>
    %cst_40 = arith.constant dense<0.000000e+00> : vector<1xf32>
    %86 = vector.multi_reduction <add>, %85, %cst_40 [0] : vector<16x1xf32> to vector<1xf32>
    %87 = vector.shape_cast %86 : vector<1xf32> to vector<1x1xf32>
    %88 = vector.shape_cast %87 : vector<1x1xf32> to vector<1x1x1xf32>
    %c0_41 = arith.constant 0 : index
    %c0_42 = arith.constant 0 : index
    %c0_43 = arith.constant 0 : index
    %89 = vector.load %arg13[%c0_41, %c0_42, %c0_43] : memref<1x1x1xf32, #tpu.memory_space<vmem>>, vector<1x1x1xf32>
    tpu.vector_store %arg13[%c0_41, %c0_42, %c0_43], %88 {strides = array<i32>} : memref<1x1x1xf32, #tpu.memory_space<vmem>>, vector<1x1x1xf32>,
    return
  }
  func.func @transform_0(%arg0: i32) -> (i32, i32) {
    %c0_i32 = arith.constant 0 : i32
    %c0_i32_0 = arith.constant 0 : i32
    return %arg0, %c0_i32 : i32, i32
  }
  func.func @transform_1(%arg0: i32) -> (i32, i32) {
    %c0_i32 = arith.constant 0 : i32
    %c0_i32_0 = arith.constant 0 : i32
    return %arg0, %c0_i32 : i32, i32
  }
  func.func @transform_2(%arg0: i32) -> (i32, i32) {
    %c0_i32 = arith.constant 0 : i32
    %c0_i32_0 = arith.constant 0 : i32
    %c0_i32_1 = arith.constant 0 : i32
    return %c0_i32, %c0_i32_0 : i32, i32
  }
  func.func @transform_3(%arg0: i32) -> (i32, i32) {
    %c0_i32 = arith.constant 0 : i32
    %c0_i32_0 = arith.constant 0 : i32
    %c0_i32_1 = arith.constant 0 : i32
    return %c0_i32, %c0_i32_0 : i32, i32
  }
  func.func @transform_4(%arg0: i32) -> (i32, i32) {
    %c0_i32 = arith.constant 0 : i32
    %c0_i32_0 = arith.constant 0 : i32
    %c0_i32_1 = arith.constant 0 : i32
    return %c0_i32, %c0_i32_0 : i32, i32
  }
  func.func @transform_5(%arg0: i32) -> (i32, i32) {
    %c0_i32 = arith.constant 0 : i32
    %c0_i32_0 = arith.constant 0 : i32
    %c0_i32_1 = arith.constant 0 : i32
    return %c0_i32, %c0_i32_0 : i32, i32
  }
  func.func @transform_6(%arg0: i32) -> (i32, i32) {
    %c0_i32 = arith.constant 0 : i32
    %c0_i32_0 = arith.constant 0 : i32
    %c0_i32_1 = arith.constant 0 : i32
    return %c0_i32, %c0_i32_0 : i32, i32
  }
  func.func @transform_7(%arg0: i32) -> (i32, i32) {
    %c0_i32 = arith.constant 0 : i32
    %c0_i32_0 = arith.constant 0 : i32
    %c0_i32_1 = arith.constant 0 : i32
    return %c0_i32, %c0_i32_0 : i32, i32
  }
  func.func @transform_8(%arg0: i32) -> (i32, i32) {
    %c0_i32 = arith.constant 0 : i32
    %c0_i32_0 = arith.constant 0 : i32
    %c0_i32_1 = arith.constant 0 : i32
    return %c0_i32, %c0_i32_0 : i32, i32
  }
  func.func @transform_9(%arg0: i32) -> (i32, i32) {
    %c0_i32 = arith.constant 0 : i32
    %c0_i32_0 = arith.constant 0 : i32
    %c0_i32_1 = arith.constant 0 : i32
    return %c0_i32, %c0_i32_0 : i32, i32
  }
  func.func @transform_10(%arg0: i32) -> (i32, i32) {
    %c0_i32 = arith.constant 0 : i32
    %c0_i32_0 = arith.constant 0 : i32
    %c0_i32_1 = arith.constant 0 : i32
    return %c0_i32, %c0_i32_0 : i32, i32
  }
  func.func @transform_11(%arg0: i32) -> (i32, i32) {
    %c0_i32 = arith.constant 0 : i32
    %c0_i32_0 = arith.constant 0 : i32
    %c0_i32_1 = arith.constant 0 : i32
    return %c0_i32, %c0_i32_0 : i32, i32
  }
  func.func @transform_12(%arg0: i32) -> (i32, i32, i32) {
    %c0_i32 = arith.constant 0 : i32
    %c0_i32_0 = arith.constant 0 : i32
    %c0_i32_1 = arith.constant 0 : i32
    return %arg0, %c0_i32, %c0_i32_0 : i32, i32, i32
  }
}

</mosaic_0001>

<bundles_post_ra>
// kernel: tpu_custom_call.1
= control target key start
LH: loop header
LB: loop body
LE: loop exit
PB: predicated region body
PF: predicated region fallthrough
CT: control target
= control target key end

     0   :  { %17 = vsyncpa [#allocation3], 0  ;;  %s1359_s0 = inlined_call_operand.hbm [shape: bf16[16,128], index: 0, kind: input, shape index: {}]   ;;  %s1360_s1 = inlined_call_operand.hbm [shape: bf16[16,128], index: 1, kind: input, shape index: {}]   ;;  %s1361_s2 = inlined_call_operand.hbm [shape: bf16[128,128], index: 2, kind: input, shape index: {}]   ;;  %s1362_s3 = inlined_call_operand.vmem [shape: f32[1,128], index: 3, kind: input, shape index: {}]   ;;  %s1363_s4 = inlined_call_operand.hbm [shape: bf16[128,256], index: 4, kind: input, shape index: {}]   ;;  %s1364_s5 = inlined_call_operand.vmem [shape: f32[1,256], index: 5, kind: input, shape index: {}]   ;;  %s1365_s6 = inlined_call_operand.hbm [shape: bf16[128,128], index: 6, kind: input, shape index: {}]   ;;  %s1366_s7 = inlined_call_operand.vmem [shape: f32[1,128], index: 7, kind: input, shape index: {}]   ;;  %s1367_s8 = inlined_call_operand.hbm [shape: bf16[128,128], index: 8, kind: input, shape index: {}]   ;;  %s1368_s9 = inlined_call_operand.vmem [shape: f32[1,128], index: 9, kind: input, shape index: {}]   ;;  %s1369_s10 = inlined_call_operand.hbm [shape: f32[256,128], index: 10, kind: input, shape index: {}]   ;;  %s1370_s11 = inlined_call_operand.vmem [shape: f32[1,128], index: 11, kind: input, shape index: {}]   ;;  %s1371_s12 = inlined_call_operand.hbm [shape: f32[1,1,1], index: 12, kind: output, shape index: {}]  }
   0x1   :  { %18 = vsyncpa [#allocation6], 0 }
   0x2   :  { %19 = vsyncpa [#allocation9], 0 }
   0x3   :  { %20 = vsyncpa [#allocation12], 0 }
   0x4   :  { %21 = vsyncpa [#allocation4], 0  ;;  %s39_s23 = sshll.u32 %s1360_s1, 4  ;;  %s1218_s24 = smov [#allocation5]   ;;  %s40_s23 = int_to_ptr.hbm [resolvable:$true] %s39_s23 }
   0x5   :  { %s41_s25 = sshll.u32 %s1218_s24, 4  ;;  %s67_s28 = sshll.u32 %s1363_s4, 4  ;;  %s42_s25 = int_to_ptr.vmem [resolvable:$true] %s41_s25  ;;  %s68_s28 = int_to_ptr.hbm [resolvable:$true] %s67_s28 }
   0x6   :  { %s1219_s29 = smov 64   ;;  %s1220_s30 = smov 4  }
   0x7   :  { %47 = dma.hbm_to_vmem [thread:$0]  %s40_s23, 128, %s42_s25, [#allocation6], %s1219_s29, %s1219_s29, %s1220_s30  }
   0x8   :  { %s1221_s13 = smov [#allocation8]   ;;  %s1222_s15 = smov 128  }
   0x9   :  { %s69_s14 = sshll.u32 %s1221_s13, 4  ;;  %s1223_s1 = smov 8   ;;  %s70_s14 = int_to_ptr.vmem [resolvable:$true] %s69_s14 }
   0xa   :  { %75 = dma.hbm_to_vmem [thread:$0]  %s68_s28, 2048, %s70_s14, [#allocation9], %s1222_s15, %s1222_s15, %s1223_s1  }
   0xb   :  { %s97_s4 = sshll.u32 %s1367_s8, 4  ;;  %s1224_s18 = smov [#allocation11]   ;;  %s98_s4 = int_to_ptr.hbm [resolvable:$true] %s97_s4 }
   0xc   :  { %s99_s19 = sshll.u32 %s1224_s18, 4  ;;  %s26_s22 = sshll.u32 %s1359_s0, 4  ;;  %s100_s19 = int_to_ptr.vmem [resolvable:$true] %s99_s19  ;;  %s27_s22 = int_to_ptr.hbm [resolvable:$true] %s26_s22 }
   0xd   :  { %105 = dma.hbm_to_vmem [thread:$0]  %s98_s4, 1024, %s100_s19, [#allocation12], %s1219_s29, %s1219_s29, %s1220_s30  }
   0xe   :  { %s1225_s23 = smov [#allocation2]   ;;  %s52_s27 = sshll.u32 %s1361_s2, 4  ;;  %s53_s27 = int_to_ptr.hbm [resolvable:$true] %s52_s27 }
   0xf   :  { %s28_s24 = sshll.u32 %s1225_s23, 4  ;;  %s82_s0 = sshll.u32 %s1365_s6, 4  ;;  %s29_s24 = int_to_ptr.vmem [resolvable:$true] %s28_s24  ;;  %s83_s0 = int_to_ptr.hbm [resolvable:$true] %s82_s0 }
  0x10   :  { %34 = dma.hbm_to_vmem [thread:$0]  %s27_s22, 128, %s29_s24, [#allocation3], %s1219_s29, %s1219_s29, %s1220_s30  }
  0x11   :  { %s1226_s13 = smov [#allocation7]   ;;  %s1227_s16 = smov [#allocation10]  }
  0x12   :  { %s54_s14 = sshll.u32 %s1226_s13, 4  ;;  %s84_s2 = sshll.u32 %s1227_s16, 4  ;;  %s55_s14 = int_to_ptr.vmem [resolvable:$true] %s54_s14  ;;  %s85_s2 = int_to_ptr.vmem [resolvable:$true] %s84_s2 }
  0x13   :  { %60 = dma.hbm_to_vmem [thread:$0]  %s53_s27, 1024, %s55_s14, [#allocation6], %s1219_s29, %s1219_s29, %s1220_s30  }
  0x14   :  { %s112_s18 = sshll.u32 %s1369_s10, 4  ;;  %s1228_s6 = smov [#allocation13]   ;;  %s113_s18 = int_to_ptr.hbm [resolvable:$true] %s112_s18 }
  0x15   :  { %90 = dma.hbm_to_vmem [thread:$0]  %s83_s0, 1024, %s85_s2, [#allocation9], %s1219_s29, %s1219_s29, %s1220_s30  }
  0x16   :  { %s114_s19 = sshll.u32 %s1228_s6, 4  ;;  %s115_s19 = int_to_ptr.vmem [resolvable:$true] %s114_s19 }
  0x17   :  { %120 = dma.hbm_to_vmem [thread:$0]  %s113_s18, 4096, %s115_s19, [#allocation12], %s1222_s15, %s1222_s15, %s1223_s1  }
  0x18   :  { %1208 = dma.done.wait [#allocation3], 128  }
  0x19   :  { %1209 = vsyncadd [#allocation3], 4294967168 }
  0x1a   :  { %1210 = dma.done.wait [#allocation6], 1152  }
  0x1b   :  { %1211 = vsyncadd [#allocation6], 4294966144 }
  0x1c   :  { %1212 = dma.done.wait [#allocation9], 3072  }
  0x1d   :  { %1213 = vsyncadd [#allocation9], 4294964224 }
  0x1e   :  { %1214 = dma.done.wait [#allocation12], 5120  }
  0x1f   :  { %1215 = vsyncadd [#allocation12], 4294962176  ;;  %v927_v0 = vld [vmem:[#allocation7 + $0x38] sm:$0xff]  ;;  %v926_v1 = vld [vmem:[#allocation7 + $0x30] sm:$0xff]  ;;  %s740_s24 = sshll.u32 %s1371_s12, 4  ;;  %vm731_vm0 = vcmask 0   ;;  %s741_s24 = int_to_ptr.hbm [resolvable:$true] %s740_s24 }
  0x20   :  { %231 = vmatpush.bf16.msra.mxu0 %v927_v0  ;;  %v847_v2 = vld [vmem:[#allocation8 + $0x70] sm:$0xf]  ;;  %v943_v3 = vld [vmem:[#allocation8 + $0x74] sm:$0xf0]  ;;  %v942_v4 = vld [vmem:[#allocation8 + $0x74] sm:$0xf] }
  0x21   :  { %v848_v5 = vor.u32 %v943_v3, %v847_v2  ;;  %v849_v6 = vld [vmem:[#allocation8 + $0x78] sm:$0xf0]  ;;  %v839_v7 = vld [vmem:[#allocation8 + $0x60] sm:$0xf]  ;;  %v941_v8 = vld [vmem:[#allocation8 + $0x64] sm:$0xf0] }
  0x22   :  { %v852_v9 = vor.u32 %v942_v4, %v849_v6  ;;  %v940_v10 = vld [vmem:[#allocation8 + $0x64] sm:$0xf]  ;;  %v841_v11 = vld [vmem:[#allocation8 + $0x68] sm:$0xf0]  ;;  %v840_v13 = vor.u32 %v941_v8, %v839_v7  ;;  %v831_v14 = vld [vmem:[#allocation8 + $0x50] sm:$0xf] }
  0x23   :  { %v925_v12 = vld [vmem:[#allocation7 + $0x28] sm:$0xff]  ;;  %350 = vmatpush.bf16.msra.mxu1 %v848_v5  ;;  %v939_v15 = vld [vmem:[#allocation8 + $0x54] sm:$0xf0]  ;;  %v844_v16 = vor.u32 %v940_v10, %v841_v11  ;;  %v938_v17 = vld [vmem:[#allocation8 + $0x54] sm:$0xf] }
  0x24   :  { %232 = vmatpush.bf16.msra.mxu0 %v926_v1  ;;  %364 = vmatpush.bf16.msra.mxu2 %v852_v9  ;;  %v833_v18 = vld [vmem:[#allocation8 + $0x58] sm:$0xf0]  ;;  %v924_v19 = vld [vmem:[#allocation7 + $0x20] sm:$0xff]  ;;  %v832_v20 = vor.u32 %v939_v15, %v831_v14  ;;  %v922_v23 = vld [vmem:[#allocation7 + $0x10] sm:$0xff] }
  0x25   :  { %v836_v21 = vor.u32 %v938_v17, %v833_v18  ;;  %v923_v22 = vld [vmem:[#allocation7 + $0x18] sm:$0xff]  ;;  %v921_v24 = vld [vmem:[#allocation7 + $0x8] sm:$0xff]  ;;  %v920_v25 = vld [vmem:[#allocation7] sm:$0xff] }
  0x26   :  { %v919_v26 = vld [vmem:[#allocation2] sm:$0xff]  ;;  %v823_v27 = vld [vmem:[#allocation8 + $0x40] sm:$0xf]  ;;  %v937_v28 = vld [vmem:[#allocation8 + $0x44] sm:$0xf0] }
  0x27   :  { %351 = vmatpush.bf16.msra.mxu1 %v840_v13  ;;  %v936_v29 = vld [vmem:[#allocation8 + $0x44] sm:$0xf]  ;;  %v824_v30 = vor.u32 %v937_v28, %v823_v27  ;;  %v825_v31 = vld [vmem:[#allocation8 + $0x48] sm:$0xf0]  ;;  %v815_v33 = vld [vmem:[#allocation8 + $0x30] sm:$0xf] }
  0x28   :  { %233 = vmatpush.bf16.msra.mxu0 %v925_v12  ;;  %365 = vmatpush.bf16.msra.mxu2 %v844_v16  ;;  %v828_v32 = vor.u32 %v936_v29, %v825_v31  ;;  %v935_v34 = vld [vmem:[#allocation8 + $0x34] sm:$0xf0]  ;;  %v934_v35 = vld [vmem:[#allocation8 + $0x34] sm:$0xf]  ;;  %v817_v37 = vld [vmem:[#allocation8 + $0x38] sm:$0xf0] }
  0x29   :  { %v816_v36 = vor.u32 %v935_v34, %v815_v33  ;;  %v820_v38 = vor.u32 %v934_v35, %v817_v37  ;;  %v807_v39 = vld [vmem:[#allocation8 + $0x20] sm:$0xf]  ;;  %v933_v40 = vld [vmem:[#allocation8 + $0x24] sm:$0xf0]  ;;  %v932_v41 = vld [vmem:[#allocation8 + $0x24] sm:$0xf] }
  0x2a   :  { %v808_v42 = vor.u32 %v933_v40, %v807_v39  ;;  %v809_v43 = vld [vmem:[#allocation8 + $0x28] sm:$0xf0]  ;;  %v799_v45 = vld [vmem:[#allocation8 + $0x10] sm:$0xf]  ;;  %v931_v46 = vld [vmem:[#allocation8 + $0x14] sm:$0xf0] }
  0x2b   :  { %352 = vmatpush.bf16.msra.mxu1 %v832_v20  ;;  %v812_v44 = vor.u32 %v932_v41, %v809_v43  ;;  %v930_v47 = vld [vmem:[#allocation8 + $0x14] sm:$0xf]  ;;  %v800_v48 = vor.u32 %v931_v46, %v799_v45  ;;  %v801_v49 = vld [vmem:[#allocation8 + $0x18] sm:$0xf0]  ;;  %v791_v50 = vld [vmem:[#allocation8] sm:$0xf] }
  0x2c   :  { %234 = vmatpush.bf16.msra.mxu0 %v924_v19  ;;  %366 = vmatpush.bf16.msra.mxu2 %v836_v21  ;;  %v929_v51 = vld [vmem:[#allocation8 + $0x4] sm:$0xf0]  ;;  %v804_v52 = vor.u32 %v930_v47, %v801_v49  ;;  %v928_v53 = vld [vmem:[#allocation8 + $0x4] sm:$0xf]  ;;  %v793_v54 = vld [vmem:[#allocation8 + $0x8] sm:$0xf0] }
  0x2d   :  { %v792_v55 = vor.u32 %v929_v51, %v791_v50  ;;  %v796_v56 = vor.u32 %v928_v53, %v793_v54  ;;  %v976_v58 = vld [vmem:[%s1362_s3] ss:$0 sm:$0xff]  ;;  %v646_v1 = vld [vmem:[#allocation13 + $0xf8] sm:$0xff]  ;;  %v644_v5 = vld [vmem:[#allocation13 + $0xe8] sm:$0xff] }
  0x2e   :  { %v630_v2 = vld [vmem:[#allocation13 + $0x78] sm:$0xff]  ;;  %v645_v3 = vld [vmem:[#allocation13 + $0xf0] sm:$0xff]  ;;  %v628_v6 = vld [vmem:[#allocation13 + $0x68] sm:$0xff] }
  0x2f   :  { %353 = vmatpush.bf16.msra.mxu1 %v824_v30  ;;  %v629_v4 = vld [vmem:[#allocation13 + $0x70] sm:$0xff]  ;;  %v643_v7 = vld [vmem:[#allocation13 + $0xe0] sm:$0xff]  ;;  %v642_v9 = vld [vmem:[#allocation13 + $0xd8] sm:$0xff] }
  0x30   :  { %235 = vmatpush.bf16.msra.mxu0 %v923_v22  ;;  %367 = vmatpush.bf16.msra.mxu2 %v828_v32  ;;  %v627_v8 = vld [vmem:[#allocation13 + $0x60] sm:$0xff]  ;;  %v951_v10 = vld [vmem:[#allocation10 + $0x38] sm:$0xff]  ;;  %v641_v12 = vld [vmem:[#allocation13 + $0xd0] sm:$0xff] }
  0x31   :  { %v626_v11 = vld [vmem:[#allocation13 + $0x58] sm:$0xff]  ;;  %469 = vmatpush.bf16.msra.mxu3 %v951_v10  ;;  %v625_v13 = vld [vmem:[#allocation13 + $0x50] sm:$0xff]  ;;  %v640_v14 = vld [vmem:[#allocation13 + $0xc8] sm:$0xff] }
  0x32   :  { %v950_v15 = vld [vmem:[#allocation10 + $0x30] sm:$0xff]  ;;  %v624_v16 = vld [vmem:[#allocation13 + $0x48] sm:$0xff]  ;;  %v639_v17 = vld [vmem:[#allocation13 + $0xc0] sm:$0xff] }
  0x33   :  { %354 = vmatpush.bf16.msra.mxu1 %v816_v36  ;;  %v623_v18 = vld [vmem:[#allocation13 + $0x40] sm:$0xff]  ;;  %v638_v19 = vld [vmem:[#allocation13 + $0xb8] sm:$0xff]  ;;  %v949_v20 = vld [vmem:[#allocation10 + $0x28] sm:$0xff] }
  0x34   :  { %236 = vmatpush.bf16.msra.mxu0 %v922_v23  ;;  %368 = vmatpush.bf16.msra.mxu2 %v820_v38  ;;  %v622_v21 = vld [vmem:[#allocation13 + $0x38] sm:$0xff]  ;;  %v637_v22 = vld [vmem:[#allocation13 + $0xb0] sm:$0xff]  ;;  %v635_v27 = vld [vmem:[#allocation13 + $0xa0] sm:$0xff] }
  0x35   :  { %470 = vmatpush.bf16.msra.mxu3 %v950_v15  ;;  %v621_v23 = vld [vmem:[#allocation13 + $0x30] sm:$0xff]  ;;  %v619_v28 = vld [vmem:[#allocation13 + $0x20] sm:$0xff]  ;;  %v634_v29 = vld [vmem:[#allocation13 + $0x98] sm:$0xff] }
  0x36   :  { %v947_v30 = vld [vmem:[#allocation10 + $0x18] sm:$0xff]  ;;  %v633_v32 = vld [vmem:[#allocation13 + $0x90] sm:$0xff]  ;;  %v632_v36 = vld [vmem:[#allocation13 + $0x88] sm:$0xff] }
  0x37   :  { %355 = vmatpush.bf16.msra.mxu1 %v808_v42  ;;  %v618_v31 = vld [vmem:[#allocation13 + $0x18] sm:$0xff]  ;;  %v1343_v33 = vld [vmem:[%s1364_s5] sm:$0x3]  ;;  %v616_v38 = vld [vmem:[#allocation13 + $0x8] sm:$0xff] }
  0x38   :  { %237 = vmatpush.bf16.msra.mxu0 %v921_v24  ;;  %369 = vmatpush.bf16.msra.mxu2 %v812_v44  ;;  %v636_v24 = vld [vmem:[#allocation13 + $0xa8] sm:$0xff]  ;;  %v267_v34 = vperm.slane %v1343_v33, 1  ;;  %v617_v35 = vld [vmem:[#allocation13 + $0x10] sm:$0xff]  ;;  %v631_v39 = vld [vmem:[#allocation13 + $0x80] sm:$0xff] }
  0x39   :  { %471 = vmatpush.bf16.msra.mxu3 %v949_v20  ;;  %v946_v37 = vld [vmem:[#allocation10 + $0x10] sm:$0xff]  ;;  %v615_v42 = vld [vmem:[#allocation13] sm:$0xff]  ;;  %v945_v43 = vld [vmem:[#allocation10 + $0x8] sm:$0xff] }
  0x3a   :  { %v944_v45 = vld [vmem:[#allocation10] sm:$0xff] }
  0x3b   :  { %356 = vmatpush.bf16.msra.mxu1 %v800_v48 }
  0x3c   :  { %238 = vmatpush.bf16.msra.mxu0 %v920_v25  ;;  %370 = vmatpush.bf16.msra.mxu2 %v804_v52  ;;  %v948_v25 = vld [vmem:[#allocation10 + $0x20] sm:$0xff] }
  0x3d   :  { %472 = vmatpush.bf16.msra.mxu3 %v948_v25 }
  0x3f   :  { %239 = vmatmul.bf16.vlgmr.msra.gmra.mxu0 %v919_v26  ;;  %357 = vmatpush.bf16.msra.mxu1 %v792_v55  ;;  %v620_v26 = vld [vmem:[#allocation13 + $0x28] sm:$0xff]  ;;  %v961_v55 = vld [vmem:[#allocation5] sm:$0xff]  }
  0x40   :  { %371 = vmatpush.bf16.msra.mxu2 %v796_v56 }
  0x41   :  { %473 = vmatpush.bf16.msra.mxu3 %v947_v30  ;;  %v955_v30 = vld [vmem:[#allocation11 + $0x18] sm:$0xff] }
  0x43   :  { %647 = vmatpush.msrb.mxu1 %v630_v2 }
  0x44   :  { %670 = vmatpush.msrb.mxu2 %v646_v1 }
  0x45   :  { %648 = vmatpush.msrb.mxu1 %v629_v4  ;;  %474 = vmatpush.bf16.msra.mxu3 %v946_v37 }
  0x46   :  { %671 = vmatpush.msrb.mxu2 %v645_v3 }
  0x47   :  { %649 = vmatpush.msrb.mxu1 %v628_v6 }
  0x48   :  { %672 = vmatpush.msrb.mxu2 %v644_v5 }
  0x49   :  { %650 = vmatpush.msrb.mxu1 %v627_v8  ;;  %475 = vmatpush.bf16.msra.mxu3 %v945_v43 }
  0x4a   :  { %673 = vmatpush.msrb.mxu2 %v643_v7 }
  0x4b   :  { %651 = vmatpush.msrb.mxu1 %v626_v11 }
  0x4c   :  { %674 = vmatpush.msrb.mxu2 %v642_v9  ;;  %v963_v9 = vunpack.c.h.bf16 %v961_v55 }
  0x4d   :  { %652 = vmatpush.msrb.mxu1 %v625_v13  ;;  %476 = vmatpush.bf16.msra.mxu3 %v944_v45 }
  0x4e   :  { %675 = vmatpush.msrb.mxu2 %v641_v12 }
  0x4f   :  { %653 = vmatpush.msrb.mxu1 %v624_v16 }
  0x50   :  { %676 = vmatpush.msrb.mxu2 %v640_v14 }
  0x51   :  { %654 = vmatpush.msrb.mxu1 %v623_v18  ;;  %v597_v18 = vmul.f32 -0.5, %v963_v9 }
  0x52   :  { %677 = vmatpush.msrb.mxu2 %v639_v17 }
  0x53   :  { %655 = vmatpush.msrb.mxu1 %v622_v21 }
  0x54   :  { %678 = vmatpush.msrb.mxu2 %v638_v19 }
  0x55   :  { %656 = vmatpush.msrb.mxu1 %v621_v23 }
  0x56   :  { %679 = vmatpush.msrb.mxu2 %v637_v22  ;;  %v599_v22 = vmul.f32 %v963_v9, %v597_v18 }
  0x57   :  { %657 = vmatpush.msrb.mxu1 %v620_v26  ;;  %v959_v26 = vld [vmem:[#allocation11 + $0x38] sm:$0xff] }
  0x58   :  { %680 = vmatpush.msrb.mxu2 %v636_v24  ;;  %554 = vmatpush.bf16.msrb.mxu0 %v959_v26 }
  0x59   :  { %658 = vmatpush.msrb.mxu1 %v619_v28  ;;  %v957_v28 = vld [vmem:[#allocation11 + $0x28] sm:$0xff] }
  0x5a   :  { %681 = vmatpush.msrb.mxu2 %v635_v27  ;;  %v958_v27 = vld [vmem:[#allocation11 + $0x30] sm:$0xff] }
  0x5b   :  { %659 = vmatpush.msrb.mxu1 %v618_v31  ;;  %v954_v31 = vld [vmem:[#allocation11 + $0x10] sm:$0xff] }
  0x5c   :  { %682 = vmatpush.msrb.mxu2 %v634_v29  ;;  %555 = vmatpush.bf16.msrb.mxu0 %v958_v27  ;;  %v956_v29 = vld [vmem:[#allocation11 + $0x20] sm:$0xff] }
  0x5d   :  { %660 = vmatpush.msrb.mxu1 %v617_v35  ;;  %v977_v35 = vld [vmem:[%s1370_s11] ss:$0 sm:$0xff] }
  0x5e   :  { %683 = vmatpush.msrb.mxu2 %v633_v32  ;;  %v953_v32 = vld [vmem:[#allocation11 + $0x8] sm:$0xff] }
  0x5f   :  { %661 = vmatpush.msrb.mxu1 %v616_v38 }
  0x60   :  { %684 = vmatpush.msrb.mxu2 %v632_v36  ;;  %556 = vmatpush.bf16.msrb.mxu0 %v957_v28 }
  0x61   :  { %662 = vmatpush.msrb.mxu1 %v615_v42 }
  0x62   :  { %685 = vmatpush.msrb.mxu2 %v631_v39 }
  0x64   :  { %557 = vmatpush.bf16.msrb.mxu0 %v956_v29 }
  0x68   :  { %558 = vmatpush.bf16.msrb.mxu0 %v955_v30 }
  0x6c   :  { %559 = vmatpush.bf16.msrb.mxu0 %v954_v31 }
  0x70   :  { %560 = vmatpush.bf16.msrb.mxu0 %v953_v32 }
  0xbc   :  { %v240_v57 = vpop.f32.mrf.mxu0 }
  0xbd   :  { %v241_v59 = vadd.f32 %v976_v58, %v240_v57 }
  0xbf   :  { %980 = vtanh.f32 %v241_v59 }
  0xc4   :  { %v242_v60 = vpop.f32.mrf.mxu0 }
  0xc5   :  { %v243_v61 = vadd.f32 %v976_v58, %v242_v60  ;;  %v981_v62 = vpop.eup %980  ;;  %v266_v60 = vperm.slane %v1343_v33, 0  ;;  %v952_v33 = vld [vmem:[#allocation11] sm:$0xff] }
  0xc6   :  { %561 = vmatpush.bf16.msrb.mxu0 %v952_v33 }
  0xc7   :  { %982 = vtanh.f32 %v243_v61 }
  0xcd   :  { %v983_v63 = vpop.eup %982 }
  0xce   :  { %v247_v0 = vpack.c.bf16 %v983_v63, %v981_v62  ;;  %v962_v63 = vunpack.c.l.bf16 %v961_v55 }
  0xd0   :  { %358 = vmatmul.bf16.vlgmr.msra.gmra.mxu1 %v247_v0  ;;  %372 = vmatmul.bf16.vlgmr.msra.gmra.mxu2 %v247_v0  ;;  %v596_v3 = vmul.f32 -0.5, %v962_v63 }
  0xd2   :  { %v598_v11 = vmul.f32 %v962_v63, %v596_v3 }
 0x14d   :  { %v359_v58 = vpop.f32.mrf.mxu1 }
 0x14e   :  { %v360_v1 = vadd.f32 %v359_v58, %v266_v60 }
 0x153   :  { %v373_v40 = vpop.f32.mrf.mxu2 }
 0x154   :  { %v374_v41 = vadd.f32 %v373_v40, %v267_v34 }
 0x155   :  { %v361_v10 = vpop.f32.mrf.mxu1 }
 0x156   :  { %v380_v44 = vand.u32 2147483647, %v374_v41  ;;  %v378_v61 = vmax.f32 %v374_v41, 0.0  ;;  %v362_v15 = vadd.f32 %v361_v10, %v266_v60 }
 0x158   :  { %v382_v46 = vsub.f32 0.0, %v380_v44  ;;  %v978_v44 = vld [vmem:[%s1366_s7] ss:$0 sm:$0xff] }
 0x15a   :  { %v384_v47 = vmul.f32 1.442695, %v382_v46 }
 0x15b   :  { %v375_v48 = vpop.f32.mrf.mxu2 }
 0x15c   :  { %984 = vpow2.f32 %v384_v47  ;;  %v376_v49 = vadd.f32 %v375_v48, %v267_v34 }
 0x15e   :  { %v381_v50 = vand.u32 2147483647, %v376_v49  ;;  %v379_v6 = vmax.f32 %v376_v49, 0.0 }
 0x160   :  { %v383_v51 = vsub.f32 0.0, %v381_v50 }
 0x162   :  { %v985_v52 = vpop.eup %984  ;;  %v386_v53 = vmul.f32 1.442695, %v383_v51 }
 0x163   :  { %v388_v54 = vadd.f32 1.0, %v985_v52 }
 0x164   :  { %986 = vpow2.f32 %v386_v53 }
 0x165   :  { %988 = vlog2.f32 %v388_v54 }
 0x16a   :  { %v987_v56 = vpop.eup %986 }
 0x16b   :  { %v989_v57 = vpop.eup %988  ;;  %v389_v59 = vadd.f32 1.0, %v987_v56 }
 0x16c   :  { %v391_v62 = vmul.f32 0.6931472, %v989_v57 }
 0x16d   :  { %990 = vlog2.f32 %v389_v59  ;;  %v979_v59 = vld [vmem:[%s1368_s9] ss:$0 sm:$0xff]  ;;  %s1229_s9 = smov [#allocation14]  }
 0x16e   :  { %v394_v0 = vadd.f32 %v391_v62, %v378_v61  ;;  %s738_s21 = sshll.u32 %s1229_s9, 4  ;;  %s739_s21 = int_to_ptr.vmem [resolvable:$true] %s738_s21 }
 0x170   :  { %v396_v2 = vmul.f32 %v962_v63, %v394_v0  ;;  %992 = vlog2.f32 %v394_v0 }
 0x172   :  { %v398_v4 = vadd.f32 %v396_v2, %v360_v1 }
 0x173   :  { %v991_v5 = vpop.eup %990 }
 0x174   :  { %v393_v7 = vmul.f32 0.6931472, %v991_v5  ;;  %686 = vmatmul.f32.vlgmr.msrb.gmra.mxu2 %v398_v4  ;;  %v612_v8 = vmul.f32 %v398_v4, %v398_v4 }
 0x176   :  { %v993_v12 = vpop.eup %992  ;;  %v395_v13 = vadd.f32 %v393_v7, %v379_v6  ;;  %663 = vmatmul.f32.vlgmr.msrb.gmra.mxu1 %v612_v8  ;;  %v151_v8 = vld [vmem:[#allocation2] sm:$0xff]  }
 0x177   :  { %v601_v14 = vmul.f32 0.6931472, %v993_v12  ;;  %v568_v10 = vunpack.c.l.bf16 %v151_v8  ;;  %v569_v18 = vunpack.c.h.bf16 %v151_v8 }
 0x178   :  { %v397_v16 = vmul.f32 %v963_v9, %v395_v13  ;;  %994 = vlog2.f32 %v395_v13 }
 0x179   :  { %v604_v17 = vsub.f32 %v598_v11, %v601_v14 }
 0x17a   :  { %v399_v19 = vadd.f32 %v397_v16, %v362_v15 }
 0x17b   :  { %606 = vadd.xlane.f32.xlu2 %v604_v17 }
 0x17c   :  { %689 = vmatmul.f32.gmra.mxu2 %v399_v19  ;;  %v400_v20 = vpack.c.bf16 %v399_v19, %v398_v4  ;;  %v613_v21 = vmul.f32 %v399_v19, %v399_v19 }
 0x17e   :  { %v995_v23 = vpop.eup %994  ;;  %477 = vmatmul.bf16.vlgmr.msra.gmra.mxu3 %v400_v20  ;;  %666 = vmatmul.f32.gmra.mxu1 %v613_v21 }
 0x17f   :  { %v603_v24 = vmul.f32 0.6931472, %v995_v23 }
 0x181   :  { %v605_v25 = vsub.f32 %v599_v22, %v603_v24 }
 0x183   :  { %608 = vadd.xlane.f32.xlu2 %v605_v25 }
 0x1ee   :  { %v607_v27 = vpop.xlane.xlu2 %606 }
 0x1f3   :  { %v664_v34 = vpop.f32.mrf.mxu1 }
 0x1f6   :  { %v609_v33 = vpop.xlane.xlu2 %608 }
 0x1f7   :  { %v687_v36 = vpop.f32.mrf.mxu2 }
 0x1f8   :  { %v688_v37 = vadd.f32 %v687_v36, %v664_v34  ;;  %v917_v34 = vadd.f32 -14.703016, %v607_v27 }
 0x1fa   :  { %v696_v38 = vadd.f32 %v977_v35, %v688_v37  ;;  %v918_v37 = vadd.f32 -14.703016, %v609_v33 }
 0x1fb   :  { %v667_v39 = vpop.f32.mrf.mxu1 }
 0x1fc   :  { %698 = vmax.xlane.f32.xlu0 %v696_v38 }
 0x1ff   :  { %v690_v40 = vpop.f32.mrf.mxu2 }
 0x200   :  { %v691_v41 = vadd.f32 %v690_v40, %v667_v39 }
 0x201   :  { %v478_v42 = vpop.f32.mrf.mxu3 }
 0x202   :  { %v697_v43 = vadd.f32 %v977_v35, %v691_v41  ;;  %v479_v45 = vadd.f32 %v978_v44, %v478_v42 }
 0x204   :  { %700 = vmax.xlane.f32.xlu0 %v697_v43  ;;  %996 = vtanh.f32 %v479_v45 }
 0x209   :  { %v480_v46 = vpop.f32.mrf.mxu3 }
 0x20a   :  { %v481_v47 = vadd.f32 %v978_v44, %v480_v46  ;;  %v997_v48 = vpop.eup %996 }
 0x20c   :  { %998 = vtanh.f32 %v481_v47 }
 0x212   :  { %v999_v49 = vpop.eup %998 }
 0x213   :  { %v485_v50 = vpack.c.bf16 %v999_v49, %v997_v48 }
 0x215   :  { %562 = vmatmul.bf16.vlgmr.msrb.gmra.mxu0 %v485_v50 }
 0x26f   :  { %v699_v51 = vpop.xlane.xlu0 %698 }
 0x270   :  { %v702_v52 = vsub.f32 %v696_v38, %v699_v51 }
 0x272   :  { %v704_v53 = vmul.f32 1.442695, %v702_v52 }
 0x274   :  { %1000 = vpow2.f32 %v704_v53 }
 0x277   :  { %v701_v54 = vpop.xlane.xlu0 %700 }
 0x278   :  { %v703_v55 = vsub.f32 %v697_v43, %v701_v54 }
 0x27a   :  { %v1001_v56 = vpop.eup %1000  ;;  %v706_v57 = vmul.f32 1.442695, %v703_v55 }
 0x27b   :  { %708 = vadd.xlane.f32.xlu1 %v1001_v56 }
 0x27c   :  { %1002 = vpow2.f32 %v706_v57 }
 0x282   :  { %v1003_v58 = vpop.eup %1002 }
 0x283   :  { %710 = vadd.xlane.f32.xlu1 %v1003_v58 }
 0x292   :  { %v563_v60 = vpop.f32.mrf.mxu0 }
 0x293   :  { %v564_v61 = vadd.f32 %v979_v59, %v563_v60 }
 0x295   :  { %v574_v62 = vand.u32 2147483647, %v564_v61  ;;  %v572_v13 = vmax.f32 %v564_v61, 0.0  ;;  %v570_v15 = vmul.f32 %v568_v10, %v564_v61 }
 0x297   :  { %v576_v63 = vsub.f32 0.0, %v574_v62 }
 0x299   :  { %v578_v0 = vmul.f32 1.442695, %v576_v63 }
 0x29a   :  { %v565_v1 = vpop.f32.mrf.mxu0 }
 0x29b   :  { %1004 = vpow2.f32 %v578_v0  ;;  %v566_v2 = vadd.f32 %v979_v59, %v565_v1 }
 0x29d   :  { %v575_v3 = vand.u32 2147483647, %v566_v2  ;;  %v573_v20 = vmax.f32 %v566_v2, 0.0  ;;  %v571_v22 = vmul.f32 %v569_v18, %v566_v2 }
 0x29f   :  { %v577_v4 = vsub.f32 0.0, %v575_v3 }
 0x2a1   :  { %v1005_v5 = vpop.eup %1004  ;;  %v580_v6 = vmul.f32 1.442695, %v577_v4 }
 0x2a2   :  { %v582_v7 = vadd.f32 1.0, %v1005_v5 }
 0x2a3   :  { %1006 = vpow2.f32 %v580_v6 }
 0x2a4   :  { %1008 = vlog2.f32 %v582_v7 }
 0x2a9   :  { %v1007_v9 = vpop.eup %1006 }
 0x2aa   :  { %v1009_v11 = vpop.eup %1008  ;;  %v583_v12 = vadd.f32 1.0, %v1007_v9 }
 0x2ab   :  { %v585_v14 = vmul.f32 0.6931472, %v1009_v11 }
 0x2ac   :  { %1010 = vlog2.f32 %v583_v12 }
 0x2ad   :  { %v588_v16 = vadd.f32 %v585_v14, %v572_v13 }
 0x2af   :  { %v590_v17 = vsub.f32 %v570_v15, %v588_v16 }
 0x2b1   :  { %592 = vadd.xlane.f32.xlu0 %v590_v17 }
 0x2b2   :  { %v1011_v19 = vpop.eup %1010 }
 0x2b3   :  { %v587_v21 = vmul.f32 0.6931472, %v1011_v19 }
 0x2b5   :  { %v589_v23 = vadd.f32 %v587_v21, %v573_v20 }
 0x2b7   :  { %v591_v24 = vsub.f32 %v571_v22, %v589_v23 }
 0x2b9   :  { %594 = vadd.xlane.f32.xlu1 %v591_v24 }
 0x2ee   :  { %v709_v25 = vpop.xlane.xlu1 %708 }
 0x2ef   :  { %1012 = vlog2.f32 %v709_v25 }
 0x2f5   :  { %v1013_v28 = vpop.eup %1012 }
 0x2f6   :  { %v711_v26 = vpop.xlane.xlu1 %710  ;;  %v713_v30 = vmul.f32 0.6931472, %v1013_v28 }
 0x2f7   :  { %1014 = vlog2.f32 %v711_v26 }
 0x2f8   :  { %v716_v32 = vadd.f32 %v713_v30, %v699_v51 }
 0x2fa   :  { %v718_v38 = vsub.f32 %v917_v34, %v716_v32 }
 0x2fd   :  { %v1015_v29 = vpop.eup %1014 }
 0x2fe   :  { %v715_v31 = vmul.f32 0.6931472, %v1015_v29 }
 0x300   :  { %v717_v35 = vadd.f32 %v715_v31, %v701_v54 }
 0x302   :  { %v719_v40 = vsub.f32 %v918_v37, %v717_v35 }
 0x324   :  { %v593_v36 = vpop.xlane.xlu0 %592 }
 0x325   :  { %v720_v39 = vsub.f32 %v593_v36, %v718_v38 }
 0x327   :  { %v722_v43 = vsub.f32 0.0, %v720_v39 }
 0x32c   :  { %v595_v41 = vpop.xlane.xlu1 %594 }
 0x32d   :  { %v721_v42 = vsub.f32 %v595_v41, %v719_v40 }
 0x32f   :  { %v723_v44 = vsub.f32 0.0, %v721_v42 }
 0x331   :  { %v724_v45 = vadd.f32 %v723_v44, %v722_v43 }
 0x333   :  { %v725_v46 = vrot.slane %v724_v45, 4 }
 0x335   :  { %v726_v47 = vadd.f32 %v725_v46, %v724_v45 }
 0x337   :  { %v727_v48 = vrot.slane %v726_v47, 2 }
 0x339   :  { %v728_v49 = vadd.f32 %v727_v48, %v726_v47 }
 0x33b   :  { %v729_v50 = vrot.slane %v728_v49, 1 }
 0x33d   :  { %v730_v51 = vadd.f32 %v729_v50, %v728_v49 }
 0x33f   :  { %732 = vst.msk [vmem:[#allocation14] sm:$0x1] %vm731_vm0, %v730_v51 }
 0x340   :  { %743 = dma.vmem_to_hbm [thread:$0]  %s739_s21, 16, %s741_s24, [#allocation4]  }
 0x341   :  { %1216 = dma.done.wait [#allocation4], 16  }
 0x342   :  { %1217 = vsyncadd [#allocation4], 4294967280 }
 0x343   :  { %748 = vsyncpa [#allocation3], 1 }
 0x344   :  { %749 = vsyncpa [#allocation6], 1 }
 0x345   :  { %750 = vsyncpa [#allocation9], 1 }
 0x346   :  { %751 = vsyncpa [#allocation12], 1 }
 0x347   :  { %752 = vsyncpa [#allocation4], 1 }

</bundles_post_ra>
